<compile_context>
chip_gen: v5e
topology: v5e:2x2
jax: 0.10.0
libtpu: 0.0.40
codegen_flags: <defaults>
</compile_context>

<pallas_src>
import jax
import jax.numpy as jnp
from jax import lax
from jax.experimental import pallas as pl
from jax.experimental.pallas import tpu as pltpu


def _round_up(x, m):
    return (x + m - 1) // m * m


def _make_basic_block_kernel(C, Wp, P_out, L, OFF):
    """Builds the per-sample kernel.

    Per-sample layout (pixels on lanes, channels on sublanes):
      x_ref     : (1, C, L)   f32  zero-padded feature map, flattened over the
                                   padded (H+2)*(W+2) pixel axis, placed at
                                   lane offset OFF inside an L-lane buffer.
      w1_ref    : (C, 9*C)    bf16 conv1 weights (BN1 scale folded); column
                                   index is (kh*3+kw)*C + cin.
      w2_ref    : (C, 9*C)    bf16 conv2 weights (BN2 scale folded).
      b1_ref    : (C, 1)      f32  folded BN1 bias.
      b2_ref    : (C, 1)      f32  folded BN2 bias.
      mask_ref  : (1, P_out)  f32  1.0 at real output pixels, 0.0 at halo/pad.
      o_ref     : (1, C, P_out) f32 output in the same padded-flat layout.
      patch_scr : (9*C, P_out) bf16 im2col scratch (reused by both convs).
      act_scr   : (C, L)      f32  extended buffer for the conv1 activation.
    """
    taps = [(kh, kw) for kh in range(3) for kw in range(3)]

    def kernel(x_ref, w1_ref, w2_ref, b1_ref, b2_ref, mask_ref, o_ref,
               patch_scr, act_scr):
        x = x_ref[0]                                         # (C, L) f32

        # ---- conv1: stack the 9 lane-shifted taps on the sublane axis of the
        #      im2col scratch, then ONE bf16 MXU matmul (C,9C)x(9C,P_out). ----
        for k, (kh, kw) in enumerate(taps):
            s = OFF + (kh - 1) * Wp + (kw - 1)               # static offset
            patch_scr[k * C:(k + 1) * C, :] = (
                x[:, s:s + P_out].astype(jnp.bfloat16))
        o1 = jnp.dot(w1_ref[...], patch_scr[...],
                     preferred_element_type=jnp.float32)     # (C, P_out) f32

        # BN1 (scale already folded into w1) + ReLU; the mask zeroes the halo
        # ring and the padded tail so conv2 sees correct zero padding.
        o1 = jnp.maximum(o1 + b1_ref[...], 0.0) * mask_ref[...]

        # Place o1 into the extended activation buffer at a 128-aligned lane
        # offset.  Only the two small halo slabs are zeroed (one lane-group
        # each) -- never the whole buffer.
        act_scr[:, 0:OFF] = jnp.zeros((C, OFF), jnp.float32)
        act_scr[:, OFF + P_out:L] = jnp.zeros((C, L - OFF - P_out), jnp.float32)
        act_scr[:, OFF:OFF + P_out] = o1

        # ---- conv2: same im2col trick. ----
        for k, (kh, kw) in enumerate(taps):
            s = OFF + (kh - 1) * Wp + (kw - 1)
            patch_scr[k * C:(k + 1) * C, :] = (
                act_scr[:, s:s + P_out].astype(jnp.bfloat16))
        o2 = jnp.dot(w2_ref[...], patch_scr[...],
                     preferred_element_type=jnp.float32)     # (C, P_out) f32

        # BN2 + identity shortcut (128-aligned centre window of x) + ReLU.
        o_ref[0] = jnp.maximum(o2 + b2_ref[...] + x[:, OFF:OFF + P_out], 0.0)

    return kernel


def basic_block_forward(x_nchw, w1, w2, bn1, bn2, eps=1e-5):
    """x_nchw: (N, C, H, W) like PyTorch. w1/w2: HWIO (3,3,C,C). Returns NCHW."""
    g1, be1, m1, v1 = bn1
    g2, be2, m2, v2 = bn2

    N, Cin, H, W = x_nchw.shape
    C = w1.shape[-1]
    assert Cin == C, "identity-shortcut config requires in_planes == planes"

    # ---- fold eval-mode BN into conv weights (scale) + bias; cast matmul
    #      operands to bf16 (accumulation stays f32 in the kernel). ----
    s1 = g1 / jnp.sqrt(v1 + eps)
    s2 = g2 / jnp.sqrt(v2 + eps)
    b1 = (be1 - m1 * s1).reshape(C, 1).astype(jnp.float32)
    b2 = (be2 - m2 * s2).reshape(C, 1).astype(jnp.float32)
    # (C_out, 9*C_in); column index = (kh*3+kw)*C + cin.
    w1f = jnp.transpose((w1 * s1).reshape(9 * C, C)).astype(jnp.bfloat16)
    w2f = jnp.transpose((w2 * s2).reshape(9 * C, C)).astype(jnp.bfloat16)

    # ---- layout prep (plain-JAX glue): NCHW -> zero-padded -> flattened
    #      padded-pixel axis on LANES, embedded at a 128-aligned halo offset
    #      so every conv tap in the kernel is a static in-bounds window. ----
    Hp, Wp = H + 2, W + 2
    P = Hp * Wp
    P_out = _round_up(P, 128)                 # lane-dense working width
    OFF = max(128, _round_up(Wp + 1, 128))    # 128-aligned halo, >= max tap offset
    L = OFF + P_out + OFF

    xpad = jnp.pad(x_nchw.astype(jnp.float32),
                   ((0, 0), (0, 0), (1, 1), (1, 1))).reshape(N, C, P)
    x_ext = jnp.zeros((N, C, L), jnp.float32).at[:, :, OFF:OFF + P].set(xpad)

    # Interior mask over padded-flat pixel positions (1 = real output pixel).
    pidx = jnp.arange(P_out)
    hh, ww = pidx // Wp, pidx % Wp
    mask = ((pidx < P) & (hh >= 1) & (hh <= H) & (ww >= 1) & (ww <= W))
    mask = mask.astype(jnp.float32).reshape(1, P_out)

    kernel = _make_basic_block_kernel(C, Wp, P_out, L, OFF)

    flops = 2 * 2 * 9 * N * H * W * C * C            # two 3x3 convs
    bytes_accessed = (x_ext.size * 4 + w1f.size * 2 + w2f.size * 2
                      + b1.size * 4 + b2.size * 4 + mask.size * 4
                      + N * C * P_out * 4)

    out_ext = pl.pallas_call(
        kernel,
        out_shape=jax.ShapeDtypeStruct((N, C, P_out), jnp.float32),
        grid=(N,),
        in_specs=[
            pl.BlockSpec((1, C, L), lambda n: (n, 0, 0)),      # x_ext
            pl.BlockSpec((C, 9 * C), lambda n: (0, 0)),        # w1 (folded)
            pl.BlockSpec((C, 9 * C), lambda n: (0, 0)),        # w2 (folded)
            pl.BlockSpec((C, 1), lambda n: (0, 0)),            # b1
            pl.BlockSpec((C, 1), lambda n: (0, 0)),            # b2
            pl.BlockSpec((1, P_out), lambda n: (0, 0)),        # interior mask
        ],
        out_specs=pl.BlockSpec((1, C, P_out), lambda n: (n, 0, 0)),
        scratch_shapes=[
            pltpu.VMEM((9 * C, P_out), jnp.bfloat16),          # im2col patches
            pltpu.VMEM((C, L), jnp.float32),                   # extended conv1 act
        ],
        compiler_params=pltpu.CompilerParams(
            dimension_semantics=("parallel",),                 # 2 TCs on v7x
            vmem_limit_bytes=32 * 1024 * 1024),
        cost_estimate=pl.CostEstimate(
            flops=flops, transcendentals=0, bytes_accessed=bytes_accessed),
    )(x_ext, w1f, w2f, b1, b2, mask)

    # Crop the padded-flat layout back to (N, C, H, W).
    out = out_ext[:, :, :P].reshape(N, C, Hp, Wp)[:, :, 1:H + 1, 1:W + 1]
    return out


def basic_block_reference(x_nchw, w1, w2, bn1, bn2, eps=1e-5):
    """Pure-JAX f32 reference (lax.conv) for correctness checking."""
    g1, be1, m1, v1 = bn1
    g2, be2, m2, v2 = bn2
    x = jnp.transpose(x_nchw, (0, 2, 3, 1)).astype(jnp.float32)
    dn = ('NHWC', 'HWIO', 'NHWC')
    o = lax.conv_general_dilated(x, w1, (1, 1), 'SAME', dimension_numbers=dn)
    o = (o - m1) / jnp.sqrt(v1 + eps) * g1 + be1
    o = jnp.maximum(o, 0.0)
    o = lax.conv_general_dilated(o, w2, (1, 1), 'SAME', dimension_numbers=dn)
    o = (o - m2) / jnp.sqrt(v2 + eps) * g2 + be2
    o = o + x                      # identity shortcut
    o = jnp.maximum(o, 0.0)
    return jnp.transpose(o, (0, 3, 1, 2))


if __name__ == "__main__":
    N, C, H, W = 2, 8, 16, 16      # in_planes == planes == 8, stride == 1
    key = jax.random.PRNGKey(0)
    ks = jax.random.split(key, 11)

    x = jax.random.normal(ks[0], (N, C, H, W), jnp.float32)

    # Conv weights in HWIO layout (kh, kw, Cin, Cout), bias=False as in module.
    w1 = 0.1 * jax.random.normal(ks[1], (3, 3, C, C), jnp.float32)
    w2 = 0.1 * jax.random.normal(ks[2], (3, 3, C, C), jnp.float32)

    # Deterministic BatchNorm parameters / running stats (eval mode).
    bn1 = (jax.random.uniform(ks[3], (C,), jnp.float32, 0.5, 1.5),   # gamma
           0.1 * jax.random.normal(ks[4], (C,), jnp.float32),        # beta
           0.1 * jax.random.normal(ks[5], (C,), jnp.float32),        # running_mean
           jax.random.uniform(ks[6], (C,), jnp.float32, 0.5, 1.5))   # running_var
    bn2 = (jax.random.uniform(ks[7], (C,), jnp.float32, 0.5, 1.5),
           0.1 * jax.random.normal(ks[8], (C,), jnp.float32),
           0.1 * jax.random.normal(ks[9], (C,), jnp.float32),
           jax.random.uniform(ks[10], (C,), jnp.float32, 0.5, 1.5))

    out = jax.block_until_ready(basic_block_forward(x, w1, w2, bn1, bn2))
    ref = basic_block_reference(x, w1, w2, bn1, bn2)

    assert out.shape == (N, C, H, W)
    err = float(jnp.max(jnp.abs(out - ref)))
    # bf16 MXU operands -> looser tolerance than the pure-f32 reference.
    assert jnp.allclose(out, ref, atol=5e-2, rtol=5e-2), f"max abs err = {err}"

    print("KERNEL_OK")
</pallas_src>

<mosaic_0001>
module attributes {stable_mosaic.version = 11 : i64} {
  func.func @kernel(%arg0: i32, %arg1: memref<1x8x640xf32, #tpu.memory_space<vmem>>, %arg2: memref<8x72xbf16, #tpu.memory_space<vmem>>, %arg3: memref<8x72xbf16, #tpu.memory_space<vmem>>, %arg4: memref<8x1xf32, #tpu.memory_space<vmem>>, %arg5: memref<8x1xf32, #tpu.memory_space<vmem>>, %arg6: memref<1x384xf32, #tpu.memory_space<vmem>>, %arg7: memref<1x8x384xf32, #tpu.memory_space<vmem>>, %arg8: memref<72x384xbf16, #tpu.memory_space<vmem>>, %arg9: memref<8x640xf32, #tpu.memory_space<vmem>>) attributes {dimension_semantics = [#tpu.dimension_semantics<parallel>], iteration_bounds = array<i64: 2>, scalar_prefetch = 0 : i64, scratch_operands = 2 : i64, tpu.core_type = #tpu.core_type<tc>, window_params = [{transform_indices = @transform_0, window_bounds = array<i64: 1, 8, 640>}, {pipeline_mode = #tpu.pipeline_mode<synchronous>, transform_indices = @transform_1, window_bounds = array<i64: 8, 72>}, {pipeline_mode = #tpu.pipeline_mode<synchronous>, transform_indices = @transform_2, window_bounds = array<i64: 8, 72>}, {pipeline_mode = #tpu.pipeline_mode<synchronous>, transform_indices = @transform_3, window_bounds = array<i64: 8, 1>}, {pipeline_mode = #tpu.pipeline_mode<synchronous>, transform_indices = @transform_4, window_bounds = array<i64: 8, 1>}, {pipeline_mode = #tpu.pipeline_mode<synchronous>, transform_indices = @transform_5, window_bounds = array<i64: 1, 384>}, {transform_indices = @transform_6, window_bounds = array<i64: 1, 8, 384>}]} {
    %c0 = arith.constant 0 : index
    %c0_0 = arith.constant 0 : index
    %c0_1 = arith.constant 0 : index
    %0 = vector.load %arg1[%c0, %c0_0, %c0_1] : memref<1x8x640xf32, #tpu.memory_space<vmem>>, vector<1x8x640xf32>
    %1 = vector.shape_cast %0 : vector<1x8x640xf32> to vector<8x640xf32>
    %2 = vector.extract_strided_slice %1 {offsets = [0, 109], sizes = [8, 384], strides = [1, 1]} : vector<8x640xf32> to vector<8x384xf32>
    %3 = arith.truncf %2 : vector<8x384xf32> to vector<8x384xbf16>
    %c0_2 = arith.constant 0 : index
    %c0_3 = arith.constant 0 : index
    %4 = vector.load %arg8[%c0_2, %c0_3] : memref<72x384xbf16, #tpu.memory_space<vmem>>, vector<8x384xbf16>
    tpu.vector_store %arg8[%c0_2, %c0_3], %3 {strides = array<i32>} : memref<72x384xbf16, #tpu.memory_space<vmem>>, vector<8x384xbf16>,
    %5 = vector.extract_strided_slice %1 {offsets = [0, 110], sizes = [8, 384], strides = [1, 1]} : vector<8x640xf32> to vector<8x384xf32>
    %6 = arith.truncf %5 : vector<8x384xf32> to vector<8x384xbf16>
    %c8 = arith.constant 8 : index
    %c0_4 = arith.constant 0 : index
    %7 = vector.load %arg8[%c8, %c0_4] : memref<72x384xbf16, #tpu.memory_space<vmem>>, vector<8x384xbf16>
    tpu.vector_store %arg8[%c8, %c0_4], %6 {strides = array<i32>} : memref<72x384xbf16, #tpu.memory_space<vmem>>, vector<8x384xbf16>,
    %8 = vector.extract_strided_slice %1 {offsets = [0, 111], sizes = [8, 384], strides = [1, 1]} : vector<8x640xf32> to vector<8x384xf32>
    %9 = arith.truncf %8 : vector<8x384xf32> to vector<8x384xbf16>
    %c16 = arith.constant 16 : index
    %c0_5 = arith.constant 0 : index
    %10 = vector.load %arg8[%c16, %c0_5] : memref<72x384xbf16, #tpu.memory_space<vmem>>, vector<8x384xbf16>
    tpu.vector_store %arg8[%c16, %c0_5], %9 {strides = array<i32>} : memref<72x384xbf16, #tpu.memory_space<vmem>>, vector<8x384xbf16>,
    %11 = vector.extract_strided_slice %1 {offsets = [0, 127], sizes = [8, 384], strides = [1, 1]} : vector<8x640xf32> to vector<8x384xf32>
    %12 = arith.truncf %11 : vector<8x384xf32> to vector<8x384xbf16>
    %c24 = arith.constant 24 : index
    %c0_6 = arith.constant 0 : index
    %13 = vector.load %arg8[%c24, %c0_6] : memref<72x384xbf16, #tpu.memory_space<vmem>>, vector<8x384xbf16>
    tpu.vector_store %arg8[%c24, %c0_6], %12 {strides = array<i32>} : memref<72x384xbf16, #tpu.memory_space<vmem>>, vector<8x384xbf16>,
    %14 = vector.extract_strided_slice %1 {offsets = [0, 128], sizes = [8, 384], strides = [1, 1]} : vector<8x640xf32> to vector<8x384xf32>
    %15 = arith.truncf %14 : vector<8x384xf32> to vector<8x384xbf16>
    %c32 = arith.constant 32 : index
    %c0_7 = arith.constant 0 : index
    %16 = vector.load %arg8[%c32, %c0_7] : memref<72x384xbf16, #tpu.memory_space<vmem>>, vector<8x384xbf16>
    tpu.vector_store %arg8[%c32, %c0_7], %15 {strides = array<i32>} : memref<72x384xbf16, #tpu.memory_space<vmem>>, vector<8x384xbf16>,
    %17 = vector.extract_strided_slice %1 {offsets = [0, 129], sizes = [8, 384], strides = [1, 1]} : vector<8x640xf32> to vector<8x384xf32>
    %18 = arith.truncf %17 : vector<8x384xf32> to vector<8x384xbf16>
    %c40 = arith.constant 40 : index
    %c0_8 = arith.constant 0 : index
    %19 = vector.load %arg8[%c40, %c0_8] : memref<72x384xbf16, #tpu.memory_space<vmem>>, vector<8x384xbf16>
    tpu.vector_store %arg8[%c40, %c0_8], %18 {strides = array<i32>} : memref<72x384xbf16, #tpu.memory_space<vmem>>, vector<8x384xbf16>,
    %20 = vector.extract_strided_slice %1 {offsets = [0, 145], sizes = [8, 384], strides = [1, 1]} : vector<8x640xf32> to vector<8x384xf32>
    %21 = arith.truncf %20 : vector<8x384xf32> to vector<8x384xbf16>
    %c48 = arith.constant 48 : index
    %c0_9 = arith.constant 0 : index
    %22 = vector.load %arg8[%c48, %c0_9] : memref<72x384xbf16, #tpu.memory_space<vmem>>, vector<8x384xbf16>
    tpu.vector_store %arg8[%c48, %c0_9], %21 {strides = array<i32>} : memref<72x384xbf16, #tpu.memory_space<vmem>>, vector<8x384xbf16>,
    %23 = vector.extract_strided_slice %1 {offsets = [0, 146], sizes = [8, 384], strides = [1, 1]} : vector<8x640xf32> to vector<8x384xf32>
    %24 = arith.truncf %23 : vector<8x384xf32> to vector<8x384xbf16>
    %c56 = arith.constant 56 : index
    %c0_10 = arith.constant 0 : index
    %25 = vector.load %arg8[%c56, %c0_10] : memref<72x384xbf16, #tpu.memory_space<vmem>>, vector<8x384xbf16>
    tpu.vector_store %arg8[%c56, %c0_10], %24 {strides = array<i32>} : memref<72x384xbf16, #tpu.memory_space<vmem>>, vector<8x384xbf16>,
    %26 = vector.extract_strided_slice %1 {offsets = [0, 147], sizes = [8, 384], strides = [1, 1]} : vector<8x640xf32> to vector<8x384xf32>
    %27 = arith.truncf %26 : vector<8x384xf32> to vector<8x384xbf16>
    %c64 = arith.constant 64 : index
    %c0_11 = arith.constant 0 : index
    %28 = vector.load %arg8[%c64, %c0_11] : memref<72x384xbf16, #tpu.memory_space<vmem>>, vector<8x384xbf16>
    tpu.vector_store %arg8[%c64, %c0_11], %27 {strides = array<i32>} : memref<72x384xbf16, #tpu.memory_space<vmem>>, vector<8x384xbf16>,
    %c0_12 = arith.constant 0 : index
    %c0_13 = arith.constant 0 : index
    %29 = vector.load %arg2[%c0_12, %c0_13] : memref<8x72xbf16, #tpu.memory_space<vmem>>, vector<8x72xbf16>
    %c0_14 = arith.constant 0 : index
    %c0_15 = arith.constant 0 : index
    %30 = vector.load %arg8[%c0_14, %c0_15] : memref<72x384xbf16, #tpu.memory_space<vmem>>, vector<72x384xbf16>
    %cst = arith.constant dense<0.000000e+00> : vector<8x384xf32>
    %31 = tpu.matmul %29, %30, %cst {dimension_numbers = #tpu.dot_dimension_numbers<[1], [0], [0], [1], [0, 0, 1, 1], [], []>} : vector<8x72xbf16>, vector<72x384xbf16>, vector<8x384xf32> -> vector<8x384xf32>
    %c0_16 = arith.constant 0 : index
    %c0_17 = arith.constant 0 : index
    %32 = vector.load %arg4[%c0_16, %c0_17] : memref<8x1xf32, #tpu.memory_space<vmem>>, vector<8x1xf32>
    %33 = vector.broadcast %32 : vector<8x1xf32> to vector<8x384xf32>
    %34 = arith.addf %31, %33 : vector<8x384xf32>
    %cst_18 = arith.constant 0.000000e+00 : f32
    %35 = vector.broadcast %cst_18 : f32 to vector<8x384xf32>
    %36 = arith.maximumf %34, %35 : vector<8x384xf32>
    %c0_19 = arith.constant 0 : index
    %c0_20 = arith.constant 0 : index
    %37 = vector.load %arg6[%c0_19, %c0_20] : memref<1x384xf32, #tpu.memory_space<vmem>>, vector<1x384xf32>
    %38 = vector.broadcast %37 : vector<1x384xf32> to vector<8x384xf32>
    %39 = arith.mulf %36, %38 : vector<8x384xf32>
    %cst_21 = arith.constant 0.000000e+00 : f32
    %40 = vector.broadcast %cst_21 : f32 to vector<8x128xf32>
    %c0_22 = arith.constant 0 : index
    %c0_23 = arith.constant 0 : index
    %41 = vector.load %arg9[%c0_22, %c0_23] : memref<8x640xf32, #tpu.memory_space<vmem>>, vector<8x128xf32>
    tpu.vector_store %arg9[%c0_22, %c0_23], %40 {strides = array<i32>} : memref<8x640xf32, #tpu.memory_space<vmem>>, vector<8x128xf32>,
    %cst_24 = arith.constant 0.000000e+00 : f32
    %42 = vector.broadcast %cst_24 : f32 to vector<8x128xf32>
    %c0_25 = arith.constant 0 : index
    %c512 = arith.constant 512 : index
    %43 = vector.load %arg9[%c0_25, %c512] : memref<8x640xf32, #tpu.memory_space<vmem>>, vector<8x128xf32>
    tpu.vector_store %arg9[%c0_25, %c512], %42 {strides = array<i32>} : memref<8x640xf32, #tpu.memory_space<vmem>>, vector<8x128xf32>,
    %c0_26 = arith.constant 0 : index
    %c128 = arith.constant 128 : index
    %44 = vector.load %arg9[%c0_26, %c128] : memref<8x640xf32, #tpu.memory_space<vmem>>, vector<8x384xf32>
    tpu.vector_store %arg9[%c0_26, %c128], %39 {strides = array<i32>} : memref<8x640xf32, #tpu.memory_space<vmem>>, vector<8x384xf32>,
    %c0_27 = arith.constant 0 : index
    %c109 = arith.constant 109 : index
    %45 = vector.load %arg9[%c0_27, %c109] : memref<8x640xf32, #tpu.memory_space<vmem>>, vector<8x384xf32>
    %46 = arith.truncf %45 : vector<8x384xf32> to vector<8x384xbf16>
    %c0_28 = arith.constant 0 : index
    %c0_29 = arith.constant 0 : index
    %47 = vector.load %arg8[%c0_28, %c0_29] : memref<72x384xbf16, #tpu.memory_space<vmem>>, vector<8x384xbf16>
    tpu.vector_store %arg8[%c0_28, %c0_29], %46 {strides = array<i32>} : memref<72x384xbf16, #tpu.memory_space<vmem>>, vector<8x384xbf16>,
    %c0_30 = arith.constant 0 : index
    %c110 = arith.constant 110 : index
    %48 = vector.load %arg9[%c0_30, %c110] : memref<8x640xf32, #tpu.memory_space<vmem>>, vector<8x384xf32>
    %49 = arith.truncf %48 : vector<8x384xf32> to vector<8x384xbf16>
    %c8_31 = arith.constant 8 : index
    %c0_32 = arith.constant 0 : index
    %50 = vector.load %arg8[%c8_31, %c0_32] : memref<72x384xbf16, #tpu.memory_space<vmem>>, vector<8x384xbf16>
    tpu.vector_store %arg8[%c8_31, %c0_32], %49 {strides = array<i32>} : memref<72x384xbf16, #tpu.memory_space<vmem>>, vector<8x384xbf16>,
    %c0_33 = arith.constant 0 : index
    %c111 = arith.constant 111 : index
    %51 = vector.load %arg9[%c0_33, %c111] : memref<8x640xf32, #tpu.memory_space<vmem>>, vector<8x384xf32>
    %52 = arith.truncf %51 : vector<8x384xf32> to vector<8x384xbf16>
    %c16_34 = arith.constant 16 : index
    %c0_35 = arith.constant 0 : index
    %53 = vector.load %arg8[%c16_34, %c0_35] : memref<72x384xbf16, #tpu.memory_space<vmem>>, vector<8x384xbf16>
    tpu.vector_store %arg8[%c16_34, %c0_35], %52 {strides = array<i32>} : memref<72x384xbf16, #tpu.memory_space<vmem>>, vector<8x384xbf16>,
    %c0_36 = arith.constant 0 : index
    %c127 = arith.constant 127 : index
    %54 = vector.load %arg9[%c0_36, %c127] : memref<8x640xf32, #tpu.memory_space<vmem>>, vector<8x384xf32>
    %55 = arith.truncf %54 : vector<8x384xf32> to vector<8x384xbf16>
    %c24_37 = arith.constant 24 : index
    %c0_38 = arith.constant 0 : index
    %56 = vector.load %arg8[%c24_37, %c0_38] : memref<72x384xbf16, #tpu.memory_space<vmem>>, vector<8x384xbf16>
    tpu.vector_store %arg8[%c24_37, %c0_38], %55 {strides = array<i32>} : memref<72x384xbf16, #tpu.memory_space<vmem>>, vector<8x384xbf16>,
    %c0_39 = arith.constant 0 : index
    %c128_40 = arith.constant 128 : index
    %57 = vector.load %arg9[%c0_39, %c128_40] : memref<8x640xf32, #tpu.memory_space<vmem>>, vector<8x384xf32>
    %58 = arith.truncf %57 : vector<8x384xf32> to vector<8x384xbf16>
    %c32_41 = arith.constant 32 : index
    %c0_42 = arith.constant 0 : index
    %59 = vector.load %arg8[%c32_41, %c0_42] : memref<72x384xbf16, #tpu.memory_space<vmem>>, vector<8x384xbf16>
    tpu.vector_store %arg8[%c32_41, %c0_42], %58 {strides = array<i32>} : memref<72x384xbf16, #tpu.memory_space<vmem>>, vector<8x384xbf16>,
    %c0_43 = arith.constant 0 : index
    %c129 = arith.constant 129 : index
    %60 = vector.load %arg9[%c0_43, %c129] : memref<8x640xf32, #tpu.memory_space<vmem>>, vector<8x384xf32>
    %61 = arith.truncf %60 : vector<8x384xf32> to vector<8x384xbf16>
    %c40_44 = arith.constant 40 : index
    %c0_45 = arith.constant 0 : index
    %62 = vector.load %arg8[%c40_44, %c0_45] : memref<72x384xbf16, #tpu.memory_space<vmem>>, vector<8x384xbf16>
    tpu.vector_store %arg8[%c40_44, %c0_45], %61 {strides = array<i32>} : memref<72x384xbf16, #tpu.memory_space<vmem>>, vector<8x384xbf16>,
    %c0_46 = arith.constant 0 : index
    %c145 = arith.constant 145 : index
    %63 = vector.load %arg9[%c0_46, %c145] : memref<8x640xf32, #tpu.memory_space<vmem>>, vector<8x384xf32>
    %64 = arith.truncf %63 : vector<8x384xf32> to vector<8x384xbf16>
    %c48_47 = arith.constant 48 : index
    %c0_48 = arith.constant 0 : index
    %65 = vector.load %arg8[%c48_47, %c0_48] : memref<72x384xbf16, #tpu.memory_space<vmem>>, vector<8x384xbf16>
    tpu.vector_store %arg8[%c48_47, %c0_48], %64 {strides = array<i32>} : memref<72x384xbf16, #tpu.memory_space<vmem>>, vector<8x384xbf16>,
    %c0_49 = arith.constant 0 : index
    %c146 = arith.constant 146 : index
    %66 = vector.load %arg9[%c0_49, %c146] : memref<8x640xf32, #tpu.memory_space<vmem>>, vector<8x384xf32>
    %67 = arith.truncf %66 : vector<8x384xf32> to vector<8x384xbf16>
    %c56_50 = arith.constant 56 : index
    %c0_51 = arith.constant 0 : index
    %68 = vector.load %arg8[%c56_50, %c0_51] : memref<72x384xbf16, #tpu.memory_space<vmem>>, vector<8x384xbf16>
    tpu.vector_store %arg8[%c56_50, %c0_51], %67 {strides = array<i32>} : memref<72x384xbf16, #tpu.memory_space<vmem>>, vector<8x384xbf16>,
    %c0_52 = arith.constant 0 : index
    %c147 = arith.constant 147 : index
    %69 = vector.load %arg9[%c0_52, %c147] : memref<8x640xf32, #tpu.memory_space<vmem>>, vector<8x384xf32>
    %70 = arith.truncf %69 : vector<8x384xf32> to vector<8x384xbf16>
    %c64_53 = arith.constant 64 : index
    %c0_54 = arith.constant 0 : index
    %71 = vector.load %arg8[%c64_53, %c0_54] : memref<72x384xbf16, #tpu.memory_space<vmem>>, vector<8x384xbf16>
    tpu.vector_store %arg8[%c64_53, %c0_54], %70 {strides = array<i32>} : memref<72x384xbf16, #tpu.memory_space<vmem>>, vector<8x384xbf16>,
    %c0_55 = arith.constant 0 : index
    %c0_56 = arith.constant 0 : index
    %72 = vector.load %arg3[%c0_55, %c0_56] : memref<8x72xbf16, #tpu.memory_space<vmem>>, vector<8x72xbf16>
    %c0_57 = arith.constant 0 : index
    %c0_58 = arith.constant 0 : index
    %73 = vector.load %arg8[%c0_57, %c0_58] : memref<72x384xbf16, #tpu.memory_space<vmem>>, vector<72x384xbf16>
    %cst_59 = arith.constant dense<0.000000e+00> : vector<8x384xf32>
    %74 = tpu.matmul %72, %73, %cst_59 {dimension_numbers = #tpu.dot_dimension_numbers<[1], [0], [0], [1], [0, 0, 1, 1], [], []>} : vector<8x72xbf16>, vector<72x384xbf16>, vector<8x384xf32> -> vector<8x384xf32>
    %c0_60 = arith.constant 0 : index
    %c0_61 = arith.constant 0 : index
    %75 = vector.load %arg5[%c0_60, %c0_61] : memref<8x1xf32, #tpu.memory_space<vmem>>, vector<8x1xf32>
    %76 = vector.broadcast %75 : vector<8x1xf32> to vector<8x384xf32>
    %77 = arith.addf %74, %76 : vector<8x384xf32>
    %78 = vector.extract_strided_slice %1 {offsets = [0, 128], sizes = [8, 384], strides = [1, 1]} : vector<8x640xf32> to vector<8x384xf32>
    %79 = arith.addf %77, %78 : vector<8x384xf32>
    %cst_62 = arith.constant 0.000000e+00 : f32
    %80 = vector.broadcast %cst_62 : f32 to vector<8x384xf32>
    %81 = arith.maximumf %79, %80 : vector<8x384xf32>
    %c0_63 = arith.constant 0 : index
    %c0_64 = arith.constant 0 : index
    %c0_65 = arith.constant 0 : index
    %82 = vector.load %arg7[%c0_63, %c0_64, %c0_65] : memref<1x8x384xf32, #tpu.memory_space<vmem>>, vector<1x8x384xf32>
    %83 = vector.shape_cast %82 : vector<1x8x384xf32> to vector<8x384xf32>
    %84 = vector.shape_cast %81 : vector<8x384xf32> to vector<1x8x384xf32>
    tpu.vector_store %arg7[%c0_63, %c0_64, %c0_65], %84 {strides = array<i32>} : memref<1x8x384xf32, #tpu.memory_space<vmem>>, vector<1x8x384xf32>,
    return
  }
  func.func @transform_0(%arg0: i32) -> (i32, i32, i32) {
    %c0_i32 = arith.constant 0 : i32
    %c0_i32_0 = arith.constant 0 : i32
    %c0_i32_1 = arith.constant 0 : i32
    return %arg0, %c0_i32, %c0_i32_0 : i32, i32, i32
  }
  func.func @transform_1(%arg0: i32) -> (i32, i32) {
    %c0_i32 = arith.constant 0 : i32
    %c0_i32_0 = arith.constant 0 : i32
    %c0_i32_1 = arith.constant 0 : i32
    return %c0_i32, %c0_i32_0 : i32, i32
  }
  func.func @transform_2(%arg0: i32) -> (i32, i32) {
    %c0_i32 = arith.constant 0 : i32
    %c0_i32_0 = arith.constant 0 : i32
    %c0_i32_1 = arith.constant 0 : i32
    return %c0_i32, %c0_i32_0 : i32, i32
  }
  func.func @transform_3(%arg0: i32) -> (i32, i32) {
    %c0_i32 = arith.constant 0 : i32
    %c0_i32_0 = arith.constant 0 : i32
    %c0_i32_1 = arith.constant 0 : i32
    return %c0_i32, %c0_i32_0 : i32, i32
  }
  func.func @transform_4(%arg0: i32) -> (i32, i32) {
    %c0_i32 = arith.constant 0 : i32
    %c0_i32_0 = arith.constant 0 : i32
    %c0_i32_1 = arith.constant 0 : i32
    return %c0_i32, %c0_i32_0 : i32, i32
  }
  func.func @transform_5(%arg0: i32) -> (i32, i32) {
    %c0_i32 = arith.constant 0 : i32
    %c0_i32_0 = arith.constant 0 : i32
    %c0_i32_1 = arith.constant 0 : i32
    return %c0_i32, %c0_i32_0 : i32, i32
  }
  func.func @transform_6(%arg0: i32) -> (i32, i32, i32) {
    %c0_i32 = arith.constant 0 : i32
    %c0_i32_0 = arith.constant 0 : i32
    %c0_i32_1 = arith.constant 0 : i32
    return %arg0, %c0_i32, %c0_i32_0 : i32, i32, i32
  }
}

</mosaic_0001>

<bundles_post_ra>
// kernel: tpu_custom_call.1
= control target key start
LH: loop header
LB: loop body
LE: loop exit
PB: predicated region body
PF: predicated region fallthrough
CT: control target
= control target key end

     0   :  { %11 = vsyncpa [#allocation5], 0  ;;  %s1613_s0 = inlined_call_operand.hbm [shape: f32[2,8,640], index: 0, kind: input, shape index: {}]   ;;  %s1614_s1 = inlined_call_operand.vmem [shape: bf16[8,72], index: 1, kind: input, shape index: {}]   ;;  %s1615_s2 = inlined_call_operand.vmem [shape: bf16[8,72], index: 2, kind: input, shape index: {}]   ;;  %s1616_s3 = inlined_call_operand.vmem [shape: f32[8,1], index: 3, kind: input, shape index: {}]   ;;  %s1617_s4 = inlined_call_operand.vmem [shape: f32[8,1], index: 4, kind: input, shape index: {}]   ;;  %s1618_s5 = inlined_call_operand.vmem [shape: f32[1,384], index: 5, kind: input, shape index: {}]   ;;  %s1619_s6 = inlined_call_operand.hbm [shape: f32[2,8,384], index: 6, kind: output, shape index: {}]  }
   0x1   :  { %13 = vsyncpa [#allocation5 + $0x1], 0 }
   0x2   :  { %14 = vsyncpa [#allocation6], 0 }
   0x3   :  { %16 = vsyncpa [#allocation6 + $0x1], 0  ;;  %s1328_s21 = smov 0   ;;  %s1330_s22 = smov 0  }
   0x4   :  { %s1332_s23 = smov 0   ;;  %s1334_s24 = smov 0  }
   0x5 LB: > { %s1349_s25 = sadd.s32 4294967295, %s1281_s24   ;;  %s988_s26 = sadd.s32 4294967294, %s1281_s24   ;;  %s1281_s24 = sphi %s1334_s24, %s1629_s24   ;;  %s1277_s23 = sphi %s1332_s23, %s1628_s23   ;;  %s1273_s22 = sphi %s1330_s22, %s1627_s22   ;;  %s1269_s21 = sphi %s1328_s21, %s1626_s21  }
   0x6   : > { %s1353_s27 = sadd.s32 1, %s1281_s24   ;;  %s29_s28 = sadd.s32 1, %s1277_s23 }
   0x7   : > { %s26_s29 = ssub.s32 %s1281_s24, %s1353_s27  ;;  %p36_p0 = scmp.ne.s32.totalorder %s1277_s23, %s1273_s22 }
   0x8   : > { %p27_p1 = scmp.eq.s32.totalorder %s26_s29, 0  ;;  %p37_p2 = scmp.eq.s32.totalorder %s1281_s24, 0 }
   0x9   : > { %p42_p3 = scmp.ne.s32.totalorder %s1273_s22, %s1269_s21  ;;  %p43_p4 = scmp.eq.s32.totalorder %s1349_s25, 0 }
   0xa   : > { %s1365_s30 = scalar_select %p27_p1, %s1277_s23, %s29_s28  }
   0xb   : > { %p38_p5 = por %p37_p2, %p36_p0  ;;  %p1367_p6 = por %p43_p4, %p42_p3 }
   0xc   : > { %1620 = sst [smem:[#allocation10_spill]] %s1365_s30  ;;  %p171_p7 = scmp.eq.s32.totalorder %s1349_s25, 1 }
   0xd   : > { %p177_p8 = scmp.eq.s32.totalorder %s988_s26, 1  ;;  %p990_p9 = scmp.ge.s32.totalorder %s1281_s24, 2 }
   0xe   : > { %p1139_p10 = scmp.lt.s32.totalorder %s1281_s24, 2  ;;  %p1374_p11 = por %p171_p7, %p36_p0 }
   0xf   : > { %p1378_p12 = por %p177_p8, %p42_p3  ;;  %s212_s10 = sand.u32 1, %s1277_s23  }
  0x10   : > { %s1123_s11 = smul.u32 40, %s1281_s24  ;;  %p1387_p13 = pnand %p1139_p10, %p38_p5 }
  0x11   : > { %s1122_s12 = smul.u32 40, %s212_s10  ;;  %s213_s20 = scalar_lea.sflag [#allocation5], %s212_s10 }
  0x12   : > { %s221_s15 = scalar_lea.hbm %s1613_s0, %s1123_s11  ;;  %p1189_p1 = pneg %p1387_p13 }
  0x13   : > { %s223_s17 = sshll.u32 %s221_s15, 4  ;;  %s216_s18 = scalar_lea.vmem [#allocation4], %s1122_s12  ;;  %s224_s17 = int_to_ptr.hbm [resolvable:$true] %s223_s17 }
  0x14   : > { %s225_s19 = sshll.u32 %s216_s18, 4  ;;  %s1185_s26 = sshra.s32 %s224_s17, 4  ;;  %s226_s19 = int_to_ptr.vmem [resolvable:$true] %s225_s19  ;;  %s1186_s26 = int_to_ptr.hbm [resolvable:$true] %s1185_s26 }
  0x15   : > { %s1187_s28 = scalar_lea.hbm %s1186_s26, 40  ;;  %s1192_s13 = scalar_lea.hbm %s1613_s0, 80 }
  0x16   : > { %p1188_p0 = scmp.ne.s32.totalorder %s1186_s26, %s1187_s28  ;;  %p1193_p4 = scmp.lt.s32.totalorder %s1186_s26, %s1613_s0 }
  0x17   : > { %p1194_p5 = scmp.lt.s32.totalorder %s1192_s13, %s1187_s28 }
  0x18   : > { %p1190_p2 = pnand %p1189_p1, %p1188_p0 }
  0x19   : > { %p1195_p7 = por %p1194_p5, %p1193_p4 }
  0x1a   : > { %p1191_p3 = pneg %p1190_p2 }
  0x1c   : > { %p1196_p8 = pnand %p1195_p7, %p1191_p3 }
  0x1e   : > { %1199 = shalt.err (!%p1196_p8)
}
  0x1f   : > { %1134 = dma.hbm_to_vmem [thread:$0]  (!%p1387_p13), %s224_s17, 640, %s226_s19, %s213_s20  }
  0x20   : > { %p992_p10 = scmp.ge.s32.totalorder %s1281_s24, 1  ;;  %p230_p0 = scmp.lt.s32.totalorder %s1281_s24, 3 }
  0x22   : > { %p231_p1 = pnand %p992_p10, %p230_p0 }
  0x23   : > { %s1404_s10 = sand.u32 (!%p231_p1), 1, %s1273_s22  }
  0x24   : > { %234 = sbr.rel (%p231_p1) target bundleno = 658 (0x292), region = 44  ;;  %s237_s12 = scalar_lea.sflag (!%p231_p1), [#allocation5], %s1404_s10 }
  0x25   : > { %s1124_s30 = smul.u32 (!%p231_p1), 40, %s1404_s10 }
  0x27   : > { %s1408_s15 = scalar_lea.vmem (!%p231_p1), [#allocation4], %s1124_s30 }
  0x29   : > { %1260 = dma.done.wait (%p1367_p6), %s237_s12, 640  }
  0x2a   : > { %1262 = vsyncadd (%p1367_p6), %s237_s12, 4294966656  ;;  %v1415_v0 = vld [vmem:[%s1408_s15 + $0x18] sm:$0xff]  ;;  %v275_v1 = vld [vmem:[%s1408_s15 + $0x20] sm:$0xff]  ;;  %s1283_s7 = smov 111   ;;  %s1284_s16 = smov 109   ;;  %vm351_vm0 = vcmask 1039360  }
  0x2b   : > { %v1419_v2 = vld [vmem:[%s1408_s15 + $0x8] sm:$0xff]  ;;  %v341_v3 = vpack.c.bf16 %v275_v1, %v1415_v0  ;;  %v338_v4 = vpack.c.bf16 %v1415_v0, %v1415_v0  ;;  %v1425_v5 = vld [vmem:[%s1408_s15 + $0x10] sm:$0xff]  ;;  %s1285_s17 = smov 127   ;;  %s1286_s18 = smov 110   ;;  %v271_v8 = vld [vmem:[%s1408_s15] sm:$0xff]  ;;  %vm330_vm1 = vcmask 7168  }
  0x2c   : > { %v337_v6 = vpack.c.bf16 %v1425_v5, %v1419_v2  ;;  %v277_v7 = vpack.c.bf16 %v1415_v0, %v1425_v5  ;;  %s1287_s19 = smov 17   ;;  %s1288_s20 = smov 1   ;;  %v276_v9 = vpack.c.bf16 %v1419_v2, %v271_v8  ;;  %vm365_vm2 = vcmask 908288  }
  0x2d   : > { %360 = vrot.lane.b32.xlu1 %v341_v3, %s1283_s7  ;;  %340 = vst [vmem:[#allocation2 + $0x38] sm:$0xf] %v338_v4  ;;  %388 = vrot.lane.b32.xlu0 %v341_v3, %s1284_s16  ;;  %s1289_s26 = smov 19   ;;  %s1290_s28 = smov 18   ;;  %vm393_vm3 = vcmask 891904   ;;  %vm286_vm4 = vcmask 1043456  }
  0x2e   : > { %339 = vst [vmem:[#allocation2 + $0x30] sm:$0xff] %v337_v6  ;;  %346 = vrot.lane.b32.xlu2 %v341_v3, %s1285_s17  ;;  %vm302_vm5 = vcmask 146432   ;;  %vm379_vm6 = vcmask 900096   ;;  %vm316_vm7 = vcmask 138240   ;;  %vm288_vm8 = vcmask 154624   ;;  %v419_v4 = vld [vmem:[%s1616_s3] sm:$0xff] }
  0x2f   : > { %vm497_vm9 = vcmask 588800  }
  0x34   : > { %v1027_v57 = vld [vmem:[#allocation2 + $0x38] sm:$0xf] }
  0x35   : > { %374 = vrot.lane.b32.xlu1 %v341_v3, %s1286_s18  ;;  %386 = vrot.lane.b32.xlu0 %v337_v6, %s1284_s16 }
  0x36   : > { %358 = vrot.lane.b32.xlu2 %v337_v6, %s1283_s7 }
  0x3d   : > { %311 = vrot.lane.b32.xlu1 %v277_v7, %s1287_s19  ;;  %372 = vrot.lane.b32.xlu0 %v337_v6, %s1286_s18 }
  0x3e   : > { %325 = vrot.lane.b32.xlu2 %v277_v7, %s1288_s20 }
  0x45   : > { %282 = vrot.lane.b32.xlu1 %v277_v7, %s1289_s26  ;;  %344 = vrot.lane.b32.xlu0 %v337_v6, %s1285_s17 }
  0x46   : > { %297 = vrot.lane.b32.xlu2 %v277_v7, %s1290_s28 }
  0x4d   : > { %323 = vrot.lane.b32.xlu1 %v276_v9, %s1288_s20  ;;  %309 = vrot.lane.b32.xlu0 %v276_v9, %s1287_s19 }
  0x4e   : > { %280 = vrot.lane.b32.xlu2 %v276_v9, %s1289_s26 }
  0x55   : > { %295 = vrot.lane.b32.xlu0 %v276_v9, %s1290_s28 }
  0x88   : > { %v1449_v10 = vpop.permute.xlu2 %346 }
  0x89   : > { %v349_v11 = vrot.slane %v1449_v10, 4 }
  0x8b   : > { %v353_v12 = vsel %vm351_vm0, %v1449_v10, %v349_v11 }
  0x8c   : > { %357 = vst [vmem:[#allocation2 + $0x44] sm:$0xf] %v353_v12 }
  0x90   : > { %v359_v13 = vpop.permute.xlu2 %358 }
  0x91   : > { %v362_v17 = vrot.slane %v359_v13, 4 }
  0x93   : > { %v1106_v58 = vld [vmem:[#allocation2 + $0x40] sm:$0xf0] }
  0x94   : > { %v1028_v62 = vor.u32 %v1106_v58, %v1027_v57 }
  0x98   : > { %v1456_v14 = vpop.permute.xlu2 %325 }
  0x99   : > { %v328_v15 = vrot.slane %v1456_v14, 4 }
  0x9b   : > { %v332_v16 = vsel %vm330_vm1, %v1456_v14, %v328_v15  ;;  %v400_v14 = vld [vmem:[%s1614_s1] sm:$0xf] }
  0x9c   : > { %336 = vst [vmem:[#allocation2 + $0x2c] sm:$0xf] %v332_v16  ;;  %v1291_v16 = vmov 0  }
  0x9d   : > { %1183 = vset.pattern.permute.xlu1 %v1291_v16  ;;  %1184 = vset.pattern.permute.xlu0 %v1291_v16 }
  0x9e   : > { %422 = vperm.xlu1 %1183, %v419_v4  }
  0x9f   : > { %v361_v18 = vpop.permute.xlu1 %360  ;;  %v389_v19 = vpop.permute.xlu0 %388 }
  0xa0   : > { %v363_v20 = vrot.slane %v361_v18, 4  ;;  %v391_v21 = vrot.slane %v389_v19, 4  ;;  %v1463_v22 = vpop.permute.xlu2 %297 }
  0xa1   : > { %v300_v23 = vrot.slane %v1463_v22, 4 }
  0xa2   : > { %v367_v24 = vsel %vm365_vm2, %v361_v18, %v363_v20  ;;  %v395_v25 = vsel %vm393_vm3, %v389_v19, %v391_v21  ;;  %v364_v26 = vsel %vm286_vm4, %v362_v17, %v363_v20 }
  0xa3   : > { %371 = vst [vmem:[#allocation2 + $0x50] sm:$0xf] %v367_v24  ;;  %v366_v27 = vsel %vm365_vm2, %v359_v13, %v364_v26  ;;  %v304_v28 = vsel %vm302_vm5, %v1463_v22, %v300_v23  ;;  %v1103_v3 = vld [vmem:[#allocation2 + $0x28] sm:$0xf0]  ;;  %v553_v22 = vld [vmem:[%s1618_s5] sm:$0x7] }
  0xa4   : > { %399 = vst [vmem:[#allocation2 + $0x68] sm:$0xf] %v395_v25  ;;  %v557_v57 = vperm.slane %v553_v22, 2  ;;  %v555_v4 = vperm.slane %v553_v22, 0 }
  0xa5   : > { %370 = vst [vmem:[#allocation2 + $0x48] sm:$0xff] %v366_v27 }
  0xa6   : > { %308 = vst [vmem:[#allocation2 + $0x14] sm:$0xf] %v304_v28 }
  0xa7   : > { %v375_v29 = vpop.permute.xlu1 %374  ;;  %v387_v30 = vpop.permute.xlu0 %386 }
  0xa8   : > { %v377_v31 = vrot.slane %v375_v29, 4  ;;  %v390_v32 = vrot.slane %v387_v30, 4  ;;  %v281_v56 = vpop.permute.xlu2 %280 }
  0xa9   : > { %v284_v59 = vrot.slane %v281_v56, 4 }
  0xaa   : > { %v381_v33 = vsel %vm379_vm6, %v375_v29, %v377_v31  ;;  %v392_v34 = vsel %vm286_vm4, %v390_v32, %v391_v21  ;;  %v1039_v52 = vld [vmem:[#allocation2 + $0x50] sm:$0xf] }
  0xab   : > { %385 = vst [vmem:[#allocation2 + $0x5c] sm:$0xf] %v381_v33  ;;  %v394_v35 = vsel %vm393_vm3, %v387_v30, %v392_v34  ;;  %v418_v36 = vld [vmem:[#allocation2 + $0x68] sm:$0xf]  ;;  %v1019_v29 = vld [vmem:[#allocation2 + $0x30] sm:$0xf] }
  0xac   : > { %v469_v37 = vunpack.c.l.b16 %v418_v36  ;;  %v467_v38 = vunpack.c.l.b16 %v394_v35  ;;  %v468_v39 = vunpack.c.h.b16 %v394_v35  ;;  %v1031_v9 = vld [vmem:[#allocation2 + $0x48] sm:$0xf]  ;;  %v1107_v12 = vld [vmem:[#allocation2 + $0x4c] sm:$0xf]  ;;  %v1104_v30 = vld [vmem:[#allocation2 + $0x34] sm:$0xf] }
  0xad   : > { %v1100_v28 = vld [vmem:[#allocation2 + $0x10] sm:$0xf0] }
  0xae   : > { %v484_v40 = vpack.c.b16 %v469_v37, %v469_v37  ;;  %v482_v41 = vpack.c.b16 %v467_v38, %v467_v38  ;;  %v483_v42 = vpack.c.b16 %v468_v39, %v468_v39 }
  0xaf   : > { %v1477_v43 = vpop.permute.xlu1 %311  ;;  %v373_v44 = vpop.permute.xlu0 %372 }
  0xb0   : > { %v314_v45 = vrot.slane %v1477_v43, 4  ;;  %v376_v46 = vrot.slane %v373_v44, 4  ;;  %v509_v47 = vsel %vm286_vm4, %v484_v40, 0  ;;  %v503_v48 = vsel %vm286_vm4, %v482_v41, 0 }
  0xb1   : > { %540 = vmatpush.bf16.msra.mxu2 %v509_v47  ;;  %514 = vmatpush.bf16.msra.mxu0 %v503_v48  ;;  %v506_v49 = vsel %vm286_vm4, %v483_v42, 0 }
  0xb2   : > { %v318_v50 = vsel %vm316_vm7, %v1477_v43, %v314_v45  ;;  %v378_v51 = vsel %vm286_vm4, %v376_v46, %v377_v31  ;;  %v1109_v53 = vld [vmem:[#allocation2 + $0x58] sm:$0xf0]  ;;  %527 = vmatpush.bf16.msra.mxu1 %v506_v49 }
  0xb3   : > { %322 = vst [vmem:[#allocation2 + $0x20] sm:$0xf] %v318_v50  ;;  %v380_v54 = vsel %vm379_vm6, %v373_v44, %v378_v51  ;;  %v1040_v55 = vor.u32 %v1109_v53, %v1039_v52 }
  0xb4   : > { %384 = vst [vmem:[#allocation2 + $0x54] sm:$0xff] %v380_v54 }
  0xb5   : > { %541 = vmatpush.bf16.msra.mxu2 %v1040_v55 }
  0xb7   : > { %v283_v60 = vpop.permute.xlu1 %282  ;;  %v345_v61 = vpop.permute.xlu0 %344 }
  0xb8   : > { %v285_v63 = vrot.slane %v283_v60, 4  ;;  %v348_v1 = vrot.slane %v345_v61, 4 }
  0xb9   : > { %542 = vmatpush.bf16.msra.mxu2 %v1028_v62 }
  0xba   : > { %v290_v6 = vsel %vm288_vm8, %v283_v60, %v285_v63  ;;  %v350_v7 = vsel %vm286_vm4, %v348_v1, %v349_v11  ;;  %v287_v8 = vsel %vm286_vm4, %v284_v59, %v285_v63  ;;  %v1015_v13 = vld [vmem:[#allocation2 + $0x20] sm:$0xf] }
  0xbb   : > { %294 = vst [vmem:[#allocation2 + $0x8] sm:$0xf] %v290_v6  ;;  %v352_v17 = vsel %vm351_vm0, %v345_v61, %v350_v7  ;;  %v289_v18 = vsel %vm288_vm8, %v281_v56, %v287_v8  ;;  %v1108_v19 = vld [vmem:[#allocation2 + $0x50] sm:$0xf0]  ;;  %v1033_v20 = vld [vmem:[#allocation2 + $0x54] sm:$0xf0]  ;;  %v1016_v21 = vor.u32 %v1103_v3, %v1015_v13 }
  0xbc   : > { %356 = vst [vmem:[#allocation2 + $0x3c] sm:$0xff] %v352_v17  ;;  %v1032_v10 = vor.u32 %v1108_v19, %v1031_v9  ;;  %v1036_v11 = vor.u32 %v1107_v12, %v1033_v20  ;;  %v556_v7 = vperm.slane %v553_v22, 1  ;;  %v1292_v19 = vmov 0.0  }
  0xbd   : > { %293 = vst [vmem:[#allocation2] sm:$0xff] %v289_v18  ;;  %543 = vmatpush.bf16.msra.mxu2 %v1016_v21 }
  0xbe   : > { %515 = vmatpush.bf16.msra.mxu0 %v1032_v10  ;;  %528 = vmatpush.bf16.msra.mxu1 %v1036_v11 }
  0xbf   : > { %v324_v24 = vpop.permute.xlu1 %323  ;;  %v310_v25 = vpop.permute.xlu0 %309 }
  0xc0   : > { %v327_v26 = vrot.slane %v324_v24, 4  ;;  %v313_v27 = vrot.slane %v310_v25, 4 }
  0xc2   : > { %v329_v31 = vsel %vm286_vm4, %v327_v26, %v328_v15  ;;  %v315_v32 = vsel %vm286_vm4, %v313_v27, %v314_v45  ;;  %v1003_v33 = vld [vmem:[#allocation2 + $0x8] sm:$0xf] }
  0xc3   : > { %v331_v34 = vsel %vm330_vm1, %v324_v24, %v329_v31  ;;  %v317_v35 = vsel %vm316_vm7, %v310_v25, %v315_v32  ;;  %v1105_v36 = vld [vmem:[#allocation2 + $0x38] sm:$0xf0]  ;;  %v1021_v37 = vld [vmem:[#allocation2 + $0x3c] sm:$0xf0]  ;;  %v1004_v38 = vor.u32 %v1100_v28, %v1003_v33 }
  0xc4   : > { %335 = vst [vmem:[#allocation2 + $0x24] sm:$0xff] %v331_v34  ;;  %v1020_v39 = vor.u32 %v1105_v36, %v1019_v29  ;;  %v1024_v40 = vor.u32 %v1104_v30, %v1021_v37  ;;  %v995_v50 = vld [vmem:[#allocation2] sm:$0xf]  ;;  %v1098_v52 = vld [vmem:[#allocation2 + $0x4] sm:$0xf] }
  0xc5   : > { %321 = vst [vmem:[#allocation2 + $0x18] sm:$0xff] %v317_v35  ;;  %544 = vmatpush.bf16.msra.mxu2 %v1004_v38 }
  0xc6   : > { %516 = vmatpush.bf16.msra.mxu0 %v1020_v39  ;;  %529 = vmatpush.bf16.msra.mxu1 %v1024_v40 }
  0xc7   : > { %v296_v15 = vpop.permute.xlu0 %295 }
  0xc8   : > { %v299_v41 = vrot.slane %v296_v15, 4  ;;  %1043 = vmatmul.msk.bf16.vlgmr.msra.gmra.mxu2 %vm497_vm9, %v400_v14 }
  0xca   : > { %v301_v42 = vsel %vm286_vm4, %v299_v41, %v300_v23 }
  0xcb   : > { %v303_v43 = vsel %vm302_vm5, %v296_v15, %v301_v42  ;;  %v1102_v44 = vld [vmem:[#allocation2 + $0x20] sm:$0xf0]  ;;  %v1009_v45 = vld [vmem:[#allocation2 + $0x24] sm:$0xf0] }
  0xcc   : > { %307 = vst [vmem:[#allocation2 + $0xc] sm:$0xff] %v303_v43  ;;  %v1007_v46 = vld [vmem:[#allocation2 + $0x18] sm:$0xf]  ;;  %v1101_v47 = vld [vmem:[#allocation2 + $0x1c] sm:$0xf] }
  0xcd   : > { %v1008_v48 = vor.u32 %v1102_v44, %v1007_v46  ;;  %v1012_v49 = vor.u32 %v1101_v47, %v1009_v45 }
  0xcf   : > { %517 = vmatpush.bf16.msra.mxu0 %v1008_v48  ;;  %530 = vmatpush.bf16.msra.mxu1 %v1012_v49 }
  0xd3   : > { %v1099_v51 = vld [vmem:[#allocation2 + $0x8] sm:$0xf0]  ;;  %v997_v53 = vld [vmem:[#allocation2 + $0xc] sm:$0xf0] }
  0xd4   : > { %v996_v54 = vor.u32 %v1099_v51, %v995_v50  ;;  %v1000_v55 = vor.u32 %v1098_v52, %v997_v53 }
  0xd6   : > { %518 = vmatpush.bf16.msra.mxu0 %v996_v54  ;;  %531 = vmatpush.bf16.msra.mxu1 %v1000_v55 }
  0xd9   : > { %1041 = vmatmul.msk.bf16.vlgmr.msra.gmra.mxu0 %vm497_vm9, %v400_v14  ;;  %1042 = vmatmul.msk.bf16.vlgmr.msra.gmra.mxu1 %vm497_vm9, %v400_v14 }
 0x110   : > { %v423_v23 = vpop.permute.xlu1 %422 }
 0x14b   : > { %v546_v56 = vpop.f32.mrf.mxu2 }
 0x14c   : > { %v547_v58 = vadd.f32 %v546_v56, %v423_v23 }
 0x14e   : > { %v552_v59 = vmax.f32 %v547_v58, 0.0  ;;  %v763_v58 = vld [vmem:[%s1617_s4] sm:$0xff] }
 0x150   : > { %v563_v60 = vmul.f32 %v557_v57, %v552_v59 }
 0x152   : > { %v657_v61 = vpack.c.bf16 %v563_v60, %v563_v60  ;;  %v665_v21 = vpack.c.bf16 0.0, %v563_v60 }
 0x153   : > { %v548_v62 = vpop.f32.mrf.mxu2 }
 0x154   : > { %659 = vst [vmem:[#allocation2 + $0x38] sm:$0xf] %v657_v61 }
 0x156   : > { %v520_v63 = vpop.f32.mrf.mxu0  ;;  %v533_v1 = vpop.f32.mrf.mxu1 }
 0x157   : > { %v521_v3 = vadd.f32 %v520_v63, %v423_v23  ;;  %v534_v6 = vadd.f32 %v533_v1, %v423_v23 }
 0x159   : > { %v550_v8 = vmax.f32 %v521_v3, 0.0  ;;  %v551_v9 = vmax.f32 %v534_v6, 0.0 }
 0x15b   : > { %v561_v12 = vmul.f32 %v555_v4, %v550_v8  ;;  %v562_v13 = vmul.f32 %v556_v7, %v551_v9 }
 0x15d   : > { %v656_v16 = vpack.c.bf16 %v562_v13, %v561_v12  ;;  %v573_v20 = vpack.c.bf16 %v561_v12, %v1292_v19  ;;  %v574_v10 = vpack.c.bf16 %v563_v60, %v562_v13 }
 0x15e   : > { %v522_v17 = vpop.f32.mrf.mxu0  ;;  %v535_v18 = vpop.f32.mrf.mxu1 }
 0x15f   : > { %658 = vst [vmem:[#allocation2 + $0x30] sm:$0xff] %v656_v16  ;;  %710 = vrot.lane.b32.xlu0 %v656_v16, %s1286_s18  ;;  %689 = vrot.lane.b32.xlu1 %v656_v16, %s1283_s7 }
 0x160   : > { %731 = vrot.lane.b32.xlu2 %v656_v16, %s1284_s16 }
 0x167   : > { %733 = vrot.lane.b32.xlu0 %v665_v21, %s1284_s16  ;;  %619 = vrot.lane.b32.xlu1 %v573_v20, %s1287_s19 }
 0x168   : > { %668 = vrot.lane.b32.xlu2 %v656_v16, %s1285_s17 }
 0x16f   : > { %640 = vrot.lane.b32.xlu0 %v573_v20, %s1288_s20  ;;  %712 = vrot.lane.b32.xlu1 %v665_v21, %s1286_s18  ;;  %s1125_s18 = smul.u32 24, %s1404_s10 }
 0x170   : > { %577 = vrot.lane.b32.xlu2 %v573_v20, %s1289_s26 }
 0x177   : > { %670 = vrot.lane.b32.xlu0 %v665_v21, %s1285_s17  ;;  %642 = vrot.lane.b32.xlu1 %v574_v10, %s1288_s20  ;;  %s269_s20 = scalar_lea.vmem [#allocation7], %s1125_s18 }
 0x178   : > { %691 = vrot.lane.b32.xlu2 %v665_v21, %s1283_s7  ;;  %s915_s11 = sshll.u32 %s269_s20, 4  ;;  %s1235_s7 = scalar_lea.hbm %s1619_s6, 48  ;;  %s916_s11 = int_to_ptr.vmem [resolvable:$true] %s915_s11 }
 0x17f   : > { %579 = vrot.lane.b32.xlu0 %v574_v10, %s1289_s26  ;;  %598 = vrot.lane.b32.xlu1 %v573_v20, %s1290_s28 }
 0x180   : > { %621 = vrot.lane.b32.xlu2 %v574_v10, %s1287_s19  ;;  %s1126_s19 = smul.u32 24, %s1349_s25  ;;  %s902_s25 = scalar_lea.sflag [#allocation6], %s1404_s10 }
 0x182   : > { %s913_s29 = scalar_lea.hbm %s1619_s6, %s1126_s19 }
 0x183   : > { %s917_s13 = sshll.u32 %s913_s29, 4  ;;  %s918_s13 = int_to_ptr.hbm [resolvable:$true] %s917_s13 }
 0x184   : > { %s1229_s14 = sshra.s32 %s918_s13, 4  ;;  %s1230_s14 = int_to_ptr.hbm [resolvable:$true] %s1229_s14 }
 0x185   : > { %s1231_s30 = scalar_lea.hbm %s1230_s14, 24  ;;  %p1236_p3 = scmp.lt.s32.totalorder %s1230_s14, %s1619_s6 }
 0x186   : > { %p1232_p6 = scmp.ne.s32.totalorder %s1230_s14, %s1231_s30  ;;  %p1237_p4 = scmp.lt.s32.totalorder %s1235_s7, %s1231_s30 }
 0x187   : > { %766 = vperm.xlu0 %1184, %v763_v58  }
 0x188   : > { %600 = vrot.lane.b32.xlu2 %v574_v10, %s1290_s28  ;;  %p1233_p13 = pnand %p1232_p6, %p1374_p11  ;;  %p1238_p5 = por %p1237_p4, %p1236_p3 }
 0x18a   : > { %p1234_p2 = pneg %p1233_p13 }
 0x18c   : > { %p1239_p7 = pnand %p1238_p5, %p1234_p2 }
 0x1ba   : > { %v732_v11 = vpop.permute.xlu2 %731 }
 0x1bb   : > { %v735_v36 = vrot.slane %v732_v11, 4 }
 0x1c2   : > { %v1532_v24 = vpop.permute.xlu2 %668 }
 0x1c3   : > { %v672_v4 = vrot.slane %v1532_v24, 4 }
 0x1ca   : > { %v1534_v25 = vpop.permute.xlu2 %577 }
 0x1d1   : > { %v711_v26 = vpop.permute.xlu0 %710  ;;  %v690_v27 = vpop.permute.xlu1 %689 }
 0x1d2   : > { %v693_v28 = vrot.slane %v690_v27, 4  ;;  %v692_v29 = vpop.permute.xlu2 %691  ;;  %v714_v51 = vrot.slane %v711_v26, 4 }
 0x1d3   : > { %v694_v30 = vrot.slane %v692_v29, 4 }
 0x1d5   : > { %v695_v31 = vsel %vm286_vm4, %v693_v28, %v694_v30  ;;  %v697_v32 = vsel %vm365_vm2, %v692_v29, %v694_v30 }
 0x1d6   : > { %v696_v33 = vsel %vm365_vm2, %v690_v27, %v695_v31  ;;  %701 = vst [vmem:[#allocation2 + $0x50] sm:$0xf] %v697_v32 }
 0x1d7   : > { %700 = vst [vmem:[#allocation2 + $0x48] sm:$0xff] %v696_v33 }
 0x1d9   : > { %v734_v34 = vpop.permute.xlu0 %733  ;;  %v620_v35 = vpop.permute.xlu1 %619 }
 0x1da   : > { %v736_v37 = vrot.slane %v734_v34, 4  ;;  %v623_v38 = vrot.slane %v620_v35, 4  ;;  %v622_v39 = vpop.permute.xlu2 %621 }
 0x1db   : > { %v624_v40 = vrot.slane %v622_v39, 4 }
 0x1dc   : > { %v737_v14 = vsel %vm286_vm4, %v735_v36, %v736_v37  ;;  %v739_v15 = vsel %vm393_vm3, %v734_v34, %v736_v37  ;;  %v1078_v34 = vld [vmem:[#allocation2 + $0x38] sm:$0xf] }
 0x1dd   : > { %v738_v41 = vsel %vm393_vm3, %v732_v11, %v737_v14  ;;  %743 = vst [vmem:[#allocation2 + $0x68] sm:$0xf] %v739_v15  ;;  %v625_v42 = vsel %vm286_vm4, %v623_v38, %v624_v40  ;;  %v627_v43 = vsel %vm316_vm7, %v622_v39, %v624_v40  ;;  %v1090_v9 = vld [vmem:[#allocation2 + $0x50] sm:$0xf]  ;;  %v1116_v40 = vld [vmem:[#allocation2 + $0x34] sm:$0xf] }
 0x1de   : > { %v626_v44 = vsel %vm316_vm7, %v620_v35, %v625_v42  ;;  %v811_v45 = vunpack.c.l.b16 %v738_v41  ;;  %v812_v46 = vunpack.c.h.b16 %v738_v41  ;;  %631 = vst [vmem:[#allocation2 + $0x20] sm:$0xf] %v627_v43  ;;  %v1082_v18 = vld [vmem:[#allocation2 + $0x48] sm:$0xf]  ;;  %v1119_v19 = vld [vmem:[#allocation2 + $0x4c] sm:$0xf] }
 0x1df   : > { %630 = vst [vmem:[#allocation2 + $0x18] sm:$0xff] %v626_v44  ;;  %v1070_v39 = vld [vmem:[#allocation2 + $0x30] sm:$0xf] }
 0x1e0   : > { %v826_v47 = vpack.c.b16 %v811_v45, %v811_v45  ;;  %v827_v48 = vpack.c.b16 %v812_v46, %v812_v46 }
 0x1e1   : > { %v641_v49 = vpop.permute.xlu0 %640  ;;  %v713_v50 = vpop.permute.xlu1 %712 }
 0x1e2   : > { %v715_v52 = vrot.slane %v713_v50, 4  ;;  %v601_v53 = vpop.permute.xlu2 %600  ;;  %v845_v54 = vsel %vm286_vm4, %v826_v47, 0  ;;  %v848_v55 = vsel %vm286_vm4, %v827_v48, 0  ;;  %v644_v6 = vrot.slane %v641_v49, 4 }
 0x1e3   : > { %v603_v22 = vrot.slane %v601_v53, 4  ;;  %856 = vmatpush.bf16.msra.mxu3 %v845_v54  ;;  %869 = vmatpush.bf16.msrb.mxu0 %v848_v55 }
 0x1e4   : > { %v716_v23 = vsel %vm286_vm4, %v714_v51, %v715_v52  ;;  %v718_v56 = vsel %vm379_vm6, %v713_v50, %v715_v52  ;;  %v762_v57 = vld [vmem:[#allocation2 + $0x68] sm:$0xf] }
 0x1e5   : > { %v717_v59 = vsel %vm379_vm6, %v711_v26, %v716_v23  ;;  %722 = vst [vmem:[#allocation2 + $0x5c] sm:$0xf] %v718_v56  ;;  %v606_v60 = vsel %vm302_vm5, %v601_v53, %v603_v22  ;;  %v813_v61 = vunpack.c.l.b16 %v762_v57 }
 0x1e6   : > { %721 = vst [vmem:[#allocation2 + $0x54] sm:$0xff] %v717_v59  ;;  %v1058_v51 = vld [vmem:[#allocation2 + $0x18] sm:$0xf] }
 0x1e7   : > { %610 = vst [vmem:[#allocation2 + $0x14] sm:$0xf] %v606_v60  ;;  %v828_v62 = vpack.c.b16 %v813_v61, %v813_v61  ;;  %v744_v61 = vld [vmem:[%s1615_s2] sm:$0xf] }
 0x1e9   : > { %v671_v63 = vpop.permute.xlu0 %670  ;;  %v643_v1 = vpop.permute.xlu1 %642  ;;  %v851_v3 = vsel %vm286_vm4, %v828_v62, 0 }
 0x1ea   : > { %v673_v7 = vrot.slane %v671_v63, 4  ;;  %v645_v8 = vrot.slane %v643_v1, 4  ;;  %882 = vmatpush.bf16.msrb.mxu1 %v851_v3 }
 0x1ec   : > { %v674_v12 = vsel %vm286_vm4, %v672_v4, %v673_v7  ;;  %v676_v13 = vsel %vm351_vm0, %v671_v63, %v673_v7  ;;  %v646_v16 = vsel %vm286_vm4, %v644_v6, %v645_v8  ;;  %v1121_v17 = vld [vmem:[#allocation2 + $0x58] sm:$0xf0]  ;;  %v648_v10 = vsel %vm330_vm1, %v643_v1, %v645_v8 }
 0x1ed   : > { %v675_v20 = vsel %vm351_vm0, %v1532_v24, %v674_v12  ;;  %680 = vst [vmem:[#allocation2 + $0x44] sm:$0xf] %v676_v13  ;;  %v647_v21 = vsel %vm330_vm1, %v641_v49, %v646_v16  ;;  %v1091_v11 = vor.u32 %v1121_v17, %v1090_v9  ;;  %v1120_v26 = vld [vmem:[#allocation2 + $0x50] sm:$0xf0]  ;;  %v1084_v27 = vld [vmem:[#allocation2 + $0x54] sm:$0xf0] }
 0x1ee   : > { %679 = vst [vmem:[#allocation2 + $0x3c] sm:$0xff] %v675_v20  ;;  %v1083_v28 = vor.u32 %v1120_v26, %v1082_v18  ;;  %v1087_v29 = vor.u32 %v1119_v19, %v1084_v27  ;;  %v581_v24 = vrot.slane %v1534_v25, 4  ;;  %v1066_v49 = vld [vmem:[#allocation2 + $0x20] sm:$0xf]  ;;  %v1112_v55 = vld [vmem:[#allocation2 + $0x10] sm:$0xf0] }
 0x1ef   : > { %651 = vst [vmem:[#allocation2 + $0x24] sm:$0xff] %v647_v21  ;;  %883 = vmatpush.bf16.msrb.mxu1 %v1091_v11 }
 0x1f0   : > { %652 = vst [vmem:[#allocation2 + $0x2c] sm:$0xf] %v648_v10  ;;  %857 = vmatpush.bf16.msra.mxu3 %v1083_v28  ;;  %870 = vmatpush.bf16.msrb.mxu0 %v1087_v29 }
 0x1f1   : > { %v580_v30 = vpop.permute.xlu0 %579  ;;  %v599_v31 = vpop.permute.xlu1 %598 }
 0x1f2   : > { %v582_v32 = vrot.slane %v580_v30, 4  ;;  %v602_v33 = vrot.slane %v599_v31, 4 }
 0x1f4   : > { %v583_v35 = vsel %vm286_vm4, %v581_v24, %v582_v32  ;;  %v585_v36 = vsel %vm288_vm8, %v580_v30, %v582_v32  ;;  %v604_v37 = vsel %vm286_vm4, %v602_v33, %v603_v22  ;;  %v1118_v38 = vld [vmem:[#allocation2 + $0x40] sm:$0xf0] }
 0x1f5   : > { %v584_v14 = vsel %vm288_vm8, %v1534_v25, %v583_v35  ;;  %589 = vst [vmem:[#allocation2 + $0x8] sm:$0xf] %v585_v36  ;;  %v605_v15 = vsel %vm302_vm5, %v599_v31, %v604_v37  ;;  %v1079_v41 = vor.u32 %v1118_v38, %v1078_v34  ;;  %v1117_v42 = vld [vmem:[#allocation2 + $0x38] sm:$0xf0]  ;;  %v1072_v43 = vld [vmem:[#allocation2 + $0x3c] sm:$0xf0] }
 0x1f6   : > { %588 = vst [vmem:[#allocation2] sm:$0xff] %v584_v14  ;;  %v1071_v44 = vor.u32 %v1117_v42, %v1070_v39  ;;  %v1075_v45 = vor.u32 %v1116_v40, %v1072_v43  ;;  %v1114_v46 = vld [vmem:[#allocation2 + $0x20] sm:$0xf0]  ;;  %v1060_v48 = vld [vmem:[#allocation2 + $0x24] sm:$0xf0] }
 0x1f7   : > { %609 = vst [vmem:[#allocation2 + $0xc] sm:$0xff] %v605_v15  ;;  %884 = vmatpush.bf16.msrb.mxu1 %v1079_v41  ;;  %v1115_v47 = vld [vmem:[#allocation2 + $0x28] sm:$0xf0]  ;;  %v1113_v25 = vld [vmem:[#allocation2 + $0x1c] sm:$0xf]  ;;  %v1059_v52 = vor.u32 %v1114_v46, %v1058_v51 }
 0x1f8   : > { %858 = vmatpush.bf16.msra.mxu3 %v1071_v44  ;;  %871 = vmatpush.bf16.msrb.mxu0 %v1075_v45  ;;  %v1067_v50 = vor.u32 %v1115_v47, %v1066_v49  ;;  %v1063_v53 = vor.u32 %v1113_v25, %v1060_v48 }
 0x1f9   : > { %v767_v62 = vpop.permute.xlu0 %766 }
 0x1fb   : > { %885 = vmatpush.bf16.msrb.mxu1 %v1067_v50 }
 0x1fc   : > { %859 = vmatpush.bf16.msra.mxu3 %v1059_v52  ;;  %872 = vmatpush.bf16.msrb.mxu0 %v1063_v53  ;;  %v1054_v54 = vld [vmem:[#allocation2 + $0x8] sm:$0xf] }
 0x1fd   : > { %v1055_v22 = vor.u32 %v1112_v55, %v1054_v54  ;;  %v1046_v23 = vld [vmem:[#allocation2] sm:$0xf]  ;;  %v1110_v56 = vld [vmem:[#allocation2 + $0x4] sm:$0xf] }
 0x1fe   : > { %v1111_v57 = vld [vmem:[#allocation2 + $0x8] sm:$0xf0]  ;;  %v1048_v58 = vld [vmem:[#allocation2 + $0xc] sm:$0xf0] }
 0x1ff   : > { %886 = vmatpush.bf16.msrb.mxu1 %v1055_v22  ;;  %v1047_v59 = vor.u32 %v1111_v57, %v1046_v23  ;;  %v1051_v60 = vor.u32 %v1110_v56, %v1048_v58 }
 0x201   : > { %860 = vmatpush.bf16.msra.mxu3 %v1047_v59  ;;  %873 = vmatpush.bf16.msrb.mxu0 %v1051_v60 }
 0x202   : > { %1094 = vmatmul.msk.bf16.vlgmr.msrb.gmra.mxu1 %vm497_vm9, %v744_v61 }
 0x204   : > { %1092 = vmatmul.msk.bf16.vlgmr.msra.gmra.mxu3 %vm497_vm9, %v744_v61  ;;  %1093 = vmatmul.msk.bf16.vlgmr.msrb.gmra.mxu0 %vm497_vm9, %v744_v61 }
 0x27f   : > { %v888_v63 = vpop.f32.mrf.mxu1 }
 0x280   : > { %v889_v1 = vadd.f32 %v888_v63, %v767_v62 }
 0x281   : > { %v875_v3 = vpop.f32.mrf.mxu0 }
 0x282   : > { %v876_v4 = vadd.f32 %v875_v3, %v767_v62  ;;  %v894_v6 = vadd.f32 %v889_v1, %v1415_v0 }
 0x284   : > { %v893_v7 = vadd.f32 %v876_v4, %v1425_v5  ;;  %v897_v8 = vmax.f32 %v894_v6, 0.0 }
 0x286   : > { %v896_v9 = vmax.f32 %v893_v7, 0.0  ;;  %900 = vst [vmem:[%s269_s20 + $0x10] sm:$0xff] %v897_v8 }
 0x287   : > { %v862_v12 = vpop.f32.mrf.mxu3  ;;  %v890_v13 = vpop.f32.mrf.mxu1 }
 0x288   : > { %899 = vst [vmem:[%s269_s20 + $0x8] sm:$0xff] %v896_v9  ;;  %v863_v16 = vadd.f32 %v862_v12, %v767_v62 }
 0x289   : > { %v877_v17 = vpop.f32.mrf.mxu0 }
 0x28a   : > { %v892_v0 = vadd.f32 %v863_v16, %v1419_v2 }
 0x28c   : > { %v895_v5 = vmax.f32 %v892_v0, 0.0 }
 0x28e   : > { %898 = vst [vmem:[%s269_s20] sm:$0xff] %v895_v5 }
 0x28f   : > { %v864_v18 = vpop.f32.mrf.mxu3 }
 0x290   : > { %1242 = shalt.err (!%p1239_p7)
}
 0x291   : > { %1129 = dma.vmem_to_hbm [thread:$0]  (%p1374_p11), %s916_s11, 384, %s918_s13, %s902_s25  }
 0x292 PF: > { %s929_s10 = sand.u32 1, %s1269_s21   ;;  %p1136_p8 = pnand %p990_p9, %p1378_p12 }
 0x293   : > { %s930_s18 = scalar_lea.sflag [#allocation6], %s929_s10 }
 0x294   : > { %p1137_p10 = pneg %p1136_p8 }
 0x296   : > { %1264 = dma.done.wait (%p1137_p10), %s930_s18, 384  }
 0x297   : > { %1266 = vsyncadd (%p1137_p10), %s930_s18, 4294966912  ;;  %s1625_s19 = sld [smem:[#allocation10_spill]]  ;;  %p19_p0 = scmp.ge.s32.totalorder %s1353_s27, 4  }
 0x298   : > { %s1626_s21 = smov %s1273_s22  ;;  %s1627_s22 = smov %s1277_s23 }
 0x299   : > { %s1629_s24 = smov %s1353_s27  ;;  %21 = sbr.rel (!%p19_p0) target bundleno = 5 (0x5), region = 89 }
 0x29d   : > { %s1628_s23 = smov %s1625_s19 }
 0x29e   :  { %936 = vsyncpa [#allocation5], 1 }
 0x29f   :  { %938 = vsyncpa [#allocation5 + $0x1], 1 }
 0x2a0   :  { %939 = vsyncpa [#allocation6], 1 }
 0x2a1   :  { %941 = vsyncpa [#allocation6 + $0x1], 1 }

</bundles_post_ra>
